<compile_context>
chip_gen: v7x
topology: tpu7x:2x2x1
jax: 0.10.0
libtpu: 0.0.40
codegen_flags: <defaults>
</compile_context>

<pallas_src>
import functools

import jax
import jax.numpy as jnp
import numpy as np
from jax import lax
from jax.experimental import pallas as pl
from jax.experimental.pallas import tpu as pltpu

RNN_HIDDEN_SIZE = 256          # fixed by the module
_BIAS_PAD = -1e9               # logit for padded vocab columns -> exp() underflows to 0
_VOCAB_ALIGN = 512             # prep-time vocab padding granularity (lane/MXU friendly)


def _round_up(x: int, m: int) -> int:
    return ((x + m - 1) // m) * m


def _vmem_capacity_bytes() -> int:
    """Per-core VMEM capacity (128 MiB v5e/v6e, 64 MiB v7x); conservative fallback."""
    try:
        info = pltpu.get_tpu_info()
        for name in ("vmem_capacity_bytes", "vmem_size_bytes", "vmem_bytes"):
            v = getattr(info, name, None)
            if v:
                return int(v)
    except Exception:
        pass
    return 64 << 20


def _pick_vmem_limit(need_bytes: int, cap_bytes: int) -> int:
    limit = int(need_bytes * 1.25) + (4 << 20)
    limit = min(limit, int(cap_bytes * 0.9))
    return max(limit, 16 << 20)


def _pick_block_v(V_pad: int, requested) -> int:
    if requested is not None:
        r = max(128, (int(requested) // 128) * 128)
        if V_pad % r == 0:
            return r
    for cand in (4096, 2048, 1024, 512, 256, 128):
        if cand <= V_pad and V_pad % cand == 0:
            return cand
    return 512


# ---------------------------------------------------------------------------
# Parameter prep (one-time, at init): keep native nn.Linear (V, H) layout, cast
# to bf16 for the MXU, pad the vocab to a multiple of _VOCAB_ALIGN with -1e9
# bias on the padded columns so softmax ignores them.  Doing this here (not per
# call) removes a V*H*2-byte HBM copy from every forward step.
# ---------------------------------------------------------------------------
def prepare_generator_params(weight, bias):
    w = jnp.asarray(weight)
    V, Hw = w.shape
    assert Hw == RNN_HIDDEN_SIZE, "weight must be (vocab, 256)"
    V_pad = _round_up(V, _VOCAB_ALIGN)
    w = w.astype(jnp.bfloat16)
    b = jnp.asarray(bias, dtype=jnp.float32).reshape(1, V)
    if V_pad != V:
        w = jnp.pad(w, ((0, V_pad - V), (0, 0)))
        b = jnp.pad(b, ((0, 0), (0, V_pad - V)), constant_values=_BIAS_PAD)
    return w, b


# ---------------------------------------------------------------------------
# Kernel 1: vocab small enough that the whole (V_pad, H) bf16 weight stays
# resident in VMEM -> single pass: fused matmul + bias + stable softmax.
# Weight/bias have constant index maps, so they are DMA'd once for the grid.
# ---------------------------------------------------------------------------
def _generator_resident_kernel(x_ref, w_ref, b_ref, o_ref):
    logits = lax.dot_general(
        x_ref[...], w_ref[...],
        dimension_numbers=(((1,), (1,)), ((), ())),   # contract H of both operands
        preferred_element_type=jnp.float32)
    logits = logits + b_ref[...]
    m = jnp.max(logits, axis=-1, keepdims=True)
    e = jnp.exp(logits - m)
    denom = jnp.sum(e, axis=-1, keepdims=True)
    # Per-row reciprocal -> exact normalization costs essentially nothing.
    o_ref[...] = (e * pl.reciprocal(denom, approx=False)).astype(o_ref.dtype)


# ---------------------------------------------------------------------------
# Kernel 2: large vocab.  grid = (batch_tile i [parallel], vocab_tile j [arbitrary]).
# Each weight tile is read from HBM exactly once per batch tile; the un-normalized
# exp values are stashed in VMEM together with the per-tile maxima; the last vocab
# tile does a pure-VPU rescale into the resident output block, which is written
# back to HBM exactly once per batch tile.
# ---------------------------------------------------------------------------
def _generator_streaming_kernel(x_ref, w_ref, b_ref, o_ref,
                                m_ref, l_ref, tmax_ref, stash_ref, *, num_v):
    j = pl.program_id(1)   # vocab tile index (innermost)

    @pl.when(j == 0)
    def _init():
        m_ref[...] = jnp.full(m_ref.shape, -jnp.inf, dtype=m_ref.dtype)
        l_ref[...] = jnp.zeros(l_ref.shape, dtype=l_ref.dtype)
        tmax_ref[...] = jnp.zeros(tmax_ref.shape, dtype=tmax_ref.dtype)

    # Single MXU pass over this weight tile (no pass-1 recompute / re-DMA).
    logits = lax.dot_general(
        x_ref[...], w_ref[...],
        dimension_numbers=(((1,), (1,)), ((), ())),
        preferred_element_type=jnp.float32)
    logits = logits + b_ref[...]

    m_j = jnp.max(logits, axis=-1, keepdims=True)      # (bb, 1) this tile's max
    e_j = jnp.exp(logits - m_j)                        # exp computed exactly once per logit
    stash_ref[j] = e_j                                 # stash un-normalized exp values

    # Record this tile's max (masked full-width store; avoids dynamic lane indexing).
    col = lax.broadcasted_iota(jnp.int32, tmax_ref.shape, 1)
    tmax_ref[...] = jnp.where(col == j, m_j, tmax_ref[...])

    # Online-softmax running statistics.
    m_old = m_ref[...]
    m_new = jnp.maximum(m_old, m_j)
    l_ref[...] = (l_ref[...] * jnp.exp(m_old - m_new)
                  + jnp.sum(e_j, axis=-1, keepdims=True) * jnp.exp(m_j - m_new))
    m_ref[...] = m_new

    # Last vocab tile: rescale the stash into the resident output block (VPU only;
    # one HBM writeback per batch tile happens when the batch-tile index advances).
    @pl.when(j == num_v - 1)
    def _finalize():
        m_fin = m_ref[...]
        inv_l = pl.reciprocal(l_ref[...], approx=False)   # per-row, exact is free
        for jj in range(num_v):                           # static unroll
            scale = jnp.exp(tmax_ref[:, jj:jj + 1] - m_fin) * inv_l      # (bb, 1)
            o_ref[:, jj:jj + 1, :] = (
                (stash_ref[jj] * scale)[:, None, :].astype(o_ref.dtype))


# ---------------------------------------------------------------------------
# Wrapper
# ---------------------------------------------------------------------------
def generator_forward(x, weight, bias, *, vocab_size=None, block_b=None,
                      block_v=None, resident_v_max=16384, force_streaming=False,
                      out_dtype=jnp.float32):
    """softmax(x @ weight^T + bias, axis=1)  (Generator.forward).

    x: (B, 256); weight: (V, 256) native nn.Linear layout, or the pre-padded bf16
    output of prepare_generator_params (then pass vocab_size=V); bias matching.
    Returns (B, vocab_size) probabilities in out_dtype (f32 default).
    """
    x = jnp.asarray(x)
    B, H = x.shape
    assert H == RNN_HIDDEN_SIZE, "Generator hidden size is fixed at 256"
    weight = jnp.asarray(weight)
    Vw, Hw = weight.shape
    assert Hw == H, "weight must be (vocab, 256) in native nn.Linear layout"

    V = int(vocab_size) if vocab_size is not None else Vw
    V_pad = _round_up(V, _VOCAB_ALIGN)

    bias_arr = jnp.asarray(bias)
    prepared = (Vw == V_pad and weight.dtype == jnp.bfloat16
                and bias_arr.ndim == 2 and bias_arr.shape == (1, V_pad)
                and bias_arr.dtype == jnp.float32)
    if prepared:
        w, b = weight, bias_arr
    else:
        # Per-call pad/cast; call prepare_generator_params once at init to keep
        # this out of the per-step hot path.
        assert Vw == V, "pass vocab_size= when using pre-padded parameters"
        w, b = prepare_generator_params(weight, bias_arr)

    xb = x.astype(jnp.bfloat16)                 # MXU-native input; halves x DMA
    out_bytes = jnp.dtype(out_dtype).itemsize

    cap = _vmem_capacity_bytes()                # generation-aware (no hard 64 MiB cap)
    budget = int(cap * 0.85)                    # headroom for Mosaic internals

    # Batch tiling: multiples of 8 sublanes; prefer >= 2 batch tiles so the
    # "parallel" axis shards across both v7x TensorCores; cap at 512 rows
    # (arithmetic-intensity sweet spot vs. the streamed weight on v6e).
    B_pad0 = _round_up(B, 8)
    if block_b is None:
        pref_b = min(512, max(8, _round_up(-(-B_pad0 // 2), 8)))
    else:
        pref_b = max(8, _round_up(int(block_b), 8))
    pref_b = min(pref_b, B_pad0)

    if resident_v_max is None:
        resident_v_max = 1 << 30

    # ---------------- resident (single-pass) path ----------------
    def _resident_block_b():
        fixed = 2 * V_pad * H * 2 + 2 * 8 * V_pad * 4       # weight + bias (2 buffers each)
        per_row = 2 * H * 2 + 2 * V_pad * out_bytes         # x + output blocks per batch row
        avail = budget - fixed
        if avail < 8 * per_row:
            return None
        return int(max(8, min(pref_b, (avail // per_row) // 8 * 8)))

    bb_res = None
    if (not force_streaming) and V_pad <= resident_v_max:
        bb_res = _resident_block_b()

    if bb_res is not None:
        bb = bb_res
        B_pad = _round_up(B_pad0, bb)
        num_b = B_pad // bb
        if B_pad != B:
            xb = jnp.pad(xb, ((0, B_pad - B), (0, 0)))
        need = (2 * V_pad * H * 2 + 2 * 8 * V_pad * 4
                + 2 * bb * H * 2 + 2 * bb * V_pad * out_bytes)
        cost = pl.CostEstimate(
            flops=2 * B_pad * H * V_pad,
            transcendentals=B_pad * V_pad,
            bytes_accessed=(B_pad * H * 2 + V_pad * H * 2 + V_pad * 4
                            + B_pad * V_pad * out_bytes))
        out = pl.pallas_call(
            _generator_resident_kernel,
            out_shape=jax.ShapeDtypeStruct((B_pad, V_pad), out_dtype),
            grid_spec=pltpu.PrefetchScalarGridSpec(
                num_scalar_prefetch=0,
                grid=(num_b,),
                in_specs=[
                    pl.BlockSpec((bb, H), lambda i: (i, 0)),
                    # NOTE: constant index maps -> weight/bias fetched from HBM once
                    # for the whole grid (single-buffering them via pipeline_mode
                    # would free a further V_pad*H*2 bytes of VMEM).
                    pl.BlockSpec((V_pad, H), lambda i: (0, 0)),
                    pl.BlockSpec((1, V_pad), lambda i: (0, 0)),
                ],
                out_specs=pl.BlockSpec((bb, V_pad), lambda i: (i, 0)),
                scratch_shapes=[]),
            compiler_params=pltpu.CompilerParams(
                dimension_semantics=("parallel",),
                vmem_limit_bytes=_pick_vmem_limit(need, cap)),
            cost_estimate=cost,
        )(xb, w, b)
        return out[:B, :V]

    # ---------------- streaming (large-vocab) path ----------------
    bv = _pick_block_v(V_pad, block_v)
    num_v = V_pad // bv
    nv8 = _round_up(num_v, 8)

    fixed = 2 * bv * H * 2 + 2 * 8 * bv * 4                  # weight + bias tiles
    per_row = (2 * H * 2                                     # x block (bf16, double-buffered)
               + 2 * nv8 * bv * out_bytes                    # resident output block (2 buffers)
               + num_v * bv * 4                              # f32 exp stash (single)
               + max(128, _round_up(num_v, 128)) * 4         # per-tile max scratch
               + 2 * 128 * 4)                                # running max / running sum
    avail = budget - fixed
    if avail < 8 * per_row:
        raise ValueError("vocab too large for the in-VMEM exp stash even at block_b=8; "
                         "a fully VMEM-bounded two-pass variant would be required")
    bb = int(max(8, min(pref_b, (avail // per_row) // 8 * 8)))

    B_pad = _round_up(B_pad0, bb)
    num_b = B_pad // bb
    if B_pad != B:
        xb = jnp.pad(xb, ((0, B_pad - B), (0, 0)))

    need = fixed + bb * per_row
    cost = pl.CostEstimate(
        flops=2 * B_pad * H * V_pad,                         # matmul runs exactly once
        transcendentals=B_pad * V_pad,                       # exp runs exactly once
        bytes_accessed=(B_pad * H * 2
                        + num_b * (V_pad * H * 2 + V_pad * 4)  # weight/bias streamed once per batch tile
                        + B_pad * V_pad * out_bytes))          # single output write
    kernel = functools.partial(_generator_streaming_kernel, num_v=num_v)
    out = pl.pallas_call(
        kernel,
        out_shape=jax.ShapeDtypeStruct((B_pad, num_v, bv), out_dtype),
        grid_spec=pltpu.PrefetchScalarGridSpec(
            num_scalar_prefetch=0,
            grid=(num_b, num_v),
            in_specs=[
                pl.BlockSpec((bb, H), lambda i, j: (i, 0)),   # x: resident per batch tile
                pl.BlockSpec((bv, H), lambda i, j: (j, 0)),   # weight: streamed, read once per batch tile
                pl.BlockSpec((1, bv), lambda i, j: (0, j)),
            ],
            # Constant block index across j -> output block stays resident in VMEM
            # for the whole vocab sweep; one HBM writeback per batch tile.
            out_specs=pl.BlockSpec((bb, num_v, bv), lambda i, j: (i, 0, 0)),
            scratch_shapes=[
                pltpu.VMEM((bb, 1), jnp.float32),             # running max
                pltpu.VMEM((bb, 1), jnp.float32),             # running sum
                pltpu.VMEM((bb, num_v), jnp.float32),         # per-tile max
                pltpu.VMEM((num_v, bb, bv), jnp.float32),     # un-normalized exp stash
            ]),
        compiler_params=pltpu.CompilerParams(
            dimension_semantics=("parallel", "arbitrary"),
            vmem_limit_bytes=_pick_vmem_limit(need, cap)),
        cost_estimate=cost,
    )(xb, w, b)
    return out.reshape(B_pad, V_pad)[:B, :V]


if __name__ == "__main__":
    key = jax.random.PRNGKey(0)
    k_x, k_w, k_b = jax.random.split(key, 3)

    batch = 8
    vocab_size = 128
    hidden = RNN_HIDDEN_SIZE

    # Deterministic synthetic parameters (nn.Linear(256, vocab_size) shapes).
    x = jax.random.normal(k_x, (batch, hidden), dtype=jnp.float32)
    weight = jax.random.normal(k_w, (vocab_size, hidden), dtype=jnp.float32) * 0.05
    bias = jax.random.normal(k_b, (vocab_size,), dtype=jnp.float32) * 0.01

    # One-time parameter prep (bf16 cast + vocab padding) outside the hot path.
    w_prep, b_prep = prepare_generator_params(weight, bias)
    fwd = jax.jit(generator_forward,
                  static_argnames=("vocab_size", "block_b", "block_v",
                                   "resident_v_max", "force_streaming", "out_dtype"))

    # Path 1: resident-weight single-pass kernel (small vocab).
    out = jax.block_until_ready(fwd(x, w_prep, b_prep, vocab_size=vocab_size))
    ref = jax.nn.softmax(x @ weight.T + bias, axis=1)
    np.testing.assert_allclose(np.asarray(out), np.asarray(ref), rtol=2e-2, atol=2e-3)

    # Path 2: streamed-weight online-softmax kernel (forced vocab tiling).
    vocab2 = 256
    k_w2, k_b2 = jax.random.split(k_w)
    weight2 = jax.random.normal(k_w2, (vocab2, hidden), dtype=jnp.float32) * 0.05
    bias2 = jax.random.normal(k_b2, (vocab2,), dtype=jnp.float32) * 0.01
    w2_prep, b2_prep = prepare_generator_params(weight2, bias2)
    out2 = jax.block_until_ready(fwd(x, w2_prep, b2_prep, vocab_size=vocab2,
                                     force_streaming=True, block_v=128))
    ref2 = jax.nn.softmax(x @ weight2.T + bias2, axis=1)
    np.testing.assert_allclose(np.asarray(out2), np.asarray(ref2), rtol=2e-2, atol=2e-3)

    print("KERNEL_OK")
</pallas_src>

<mosaic_0001>
module attributes {stable_mosaic.version = 11 : i64} {
  func.func @_generator_resident_kernel(%arg0: i32, %arg1: memref<8x256xbf16, #tpu.memory_space<vmem>>, %arg2: memref<512x256xbf16, #tpu.memory_space<vmem>>, %arg3: memref<1x512xf32, #tpu.memory_space<vmem>>, %arg4: memref<8x512xf32, #tpu.memory_space<vmem>>) attributes {dimension_semantics = [#tpu.dimension_semantics<parallel>], iteration_bounds = array<i64: 1>, scalar_prefetch = 0 : i64, scratch_operands = 0 : i64, tpu.core_type = #tpu.core_type<tc>, window_params = [{transform_indices = @transform_0, window_bounds = array<i64: 8, 256>}, {pipeline_mode = #tpu.pipeline_mode<synchronous>, transform_indices = @transform_1, window_bounds = array<i64: 512, 256>}, {pipeline_mode = #tpu.pipeline_mode<synchronous>, transform_indices = @transform_2, window_bounds = array<i64: 1, 512>}, {transform_indices = @transform_3, window_bounds = array<i64: 8, 512>}]} {
    %c0 = arith.constant 0 : index
    %c0_0 = arith.constant 0 : index
    %0 = vector.load %arg1[%c0, %c0_0] : memref<8x256xbf16, #tpu.memory_space<vmem>>, vector<8x256xbf16>
    %c0_1 = arith.constant 0 : index
    %c0_2 = arith.constant 0 : index
    %1 = vector.load %arg2[%c0_1, %c0_2] : memref<512x256xbf16, #tpu.memory_space<vmem>>, vector<512x256xbf16>
    %cst = arith.constant dense<0.000000e+00> : vector<8x512xf32>
    %2 = tpu.matmul %0, %1, %cst {dimension_numbers = #tpu.dot_dimension_numbers<[1], [1], [0], [0], [0, 0, 1, 0], [], []>} : vector<8x256xbf16>, vector<512x256xbf16>, vector<8x512xf32> -> vector<8x512xf32>
    %c0_3 = arith.constant 0 : index
    %c0_4 = arith.constant 0 : index
    %3 = vector.load %arg3[%c0_3, %c0_4] : memref<1x512xf32, #tpu.memory_space<vmem>>, vector<1x512xf32>
    %4 = vector.broadcast %3 : vector<1x512xf32> to vector<8x512xf32>
    %5 = arith.addf %2, %4 : vector<8x512xf32>
    %cst_5 = arith.constant dense<0xFF800000> : vector<8xf32>
    %6 = vector.multi_reduction <maximumf>, %5, %cst_5 [1] : vector<8x512xf32> to vector<8xf32>
    %7 = vector.shape_cast %6 : vector<8xf32> to vector<8x1xf32>
    %8 = vector.broadcast %7 : vector<8x1xf32> to vector<8x512xf32>
    %9 = arith.subf %5, %8 : vector<8x512xf32>
    %10 = math.exp %9 : vector<8x512xf32>
    %cst_6 = arith.constant dense<0.000000e+00> : vector<8xf32>
    %11 = vector.multi_reduction <add>, %10, %cst_6 [1] : vector<8x512xf32> to vector<8xf32>
    %12 = vector.shape_cast %11 : vector<8xf32> to vector<8x1xf32>
    %13 = tpu.reciprocal %12 : vector<8x1xf32> -> vector<8x1xf32>
    %14 = vector.broadcast %13 : vector<8x1xf32> to vector<8x512xf32>
    %15 = arith.mulf %10, %14 : vector<8x512xf32>
    %c0_7 = arith.constant 0 : index
    %c0_8 = arith.constant 0 : index
    %16 = vector.load %arg4[%c0_7, %c0_8] : memref<8x512xf32, #tpu.memory_space<vmem>>, vector<8x512xf32>
    tpu.vector_store %arg4[%c0_7, %c0_8], %15 {strides = array<i32>} : memref<8x512xf32, #tpu.memory_space<vmem>>, vector<8x512xf32>,
    return
  }
  func.func @transform_0(%arg0: i32) -> (i32, i32) {
    %c0_i32 = arith.constant 0 : i32
    %c0_i32_0 = arith.constant 0 : i32
    return %arg0, %c0_i32 : i32, i32
  }
  func.func @transform_1(%arg0: i32) -> (i32, i32) {
    %c0_i32 = arith.constant 0 : i32
    %c0_i32_0 = arith.constant 0 : i32
    %c0_i32_1 = arith.constant 0 : i32
    return %c0_i32, %c0_i32_0 : i32, i32
  }
  func.func @transform_2(%arg0: i32) -> (i32, i32) {
    %c0_i32 = arith.constant 0 : i32
    %c0_i32_0 = arith.constant 0 : i32
    %c0_i32_1 = arith.constant 0 : i32
    return %c0_i32, %c0_i32_0 : i32, i32
  }
  func.func @transform_3(%arg0: i32) -> (i32, i32) {
    %c0_i32 = arith.constant 0 : i32
    %c0_i32_0 = arith.constant 0 : i32
    return %arg0, %c0_i32 : i32, i32
  }
}

</mosaic_0001>

<bundles_post_ra>
// kernel: generator_forward.1
= control target key start
LH: loop header
LB: loop body
LE: loop exit
PB: predicated region body
PF: predicated region fallthrough
CT: control target
= control target key end

     0   :  { %8 = vsyncpa [#allocation3], 0  ;;  %s761_s12 = smov [#allocation2]   ;;  %s820_s0 = inlined_call_operand.vmem [shape: bf16[8,256], index: 0, kind: input, shape index: {}]   ;;  %s821_s1 = inlined_call_operand.hbm [shape: bf16[512,256], index: 1, kind: input, shape index: {}]   ;;  %s822_s2 = inlined_call_operand.vmem [shape: f32[1,512], index: 2, kind: input, shape index: {}]   ;;  %s823_s3 = inlined_call_operand.vmem [shape: f32[8,512], index: 3, kind: output, shape index: {}]  }
   0x1   :  { %s16_s13 = sshll.u32 %s761_s12, 4  ;;  %s737_s16 = scalar_lea.hbm %s821_s1, 8192  ;;  %s17_s13 = int_to_ptr.vmem [resolvable:$true] %s16_s13 }
   0x2   :  { %p738_p0 = scmp.ne.s32.totalorder %s821_s1, %s737_s16  ;;  %p741_p1 = scmp.lt.u32.totalorder %s737_s16, %s821_s1 }
   0x4   :  { %p743_p2 = pnand %p741_p1, %p738_p0 }
   0x6   :  { %746 = shalt.err (!%p743_p2)
}
   0x7   :  { %s747_s21 = scalar_lea.vmem %s17_s13, 8192  ;;  %p752_p4 = scmp.lt.s32.totalorder %s17_s13, %s17_s13 }
   0x8   :  { %p748_p3 = scmp.ne.s32.totalorder %s17_s13, %s747_s21  ;;  %p753_p5 = scmp.lt.s32.totalorder %s747_s21, %s747_s21 }
   0xa   :  { %p754_p6 = por %p753_p5, %p752_p4 }
   0xc   :  { %p755_p7 = pnand %p754_p6, %p748_p3 }
   0xe   :  { %758 = shalt.err (!%p755_p7)
}
   0xf   :  { %s762_s22 = smov 128   ;;  %s763_s23 = smov 8  }
  0x10   :  { %22 = dma.hbm_to_vmem [thread:$0]  %s821_s1, 8192, %s17_s13, [#allocation3], %s762_s22, %s762_s22, %s763_s23  }
  0x11   :  { %759 = dma.done.wait [#allocation3], 8192  }
  0x12   :  { %760 = vsyncadd [#allocation3], 4294959104  ;;  %v629_v0 = vld [vmem:[#allocation2 + $0x4] ss:$8 sps:$4 sm:$0xff]   ;;  %v633_v2 = vld [vmem:[#allocation2] ss:$8 sps:$4 sm:$0xff]  }
  0x13   :  { %v631_v1 = vld [vmem:[#allocation2 + $0x104] ss:$8 sps:$4 sm:$0xff]   ;;  %442 = vmatprep.subr.bf16.mxu0 %v629_v0  ;;  %v634_v3 = vld [vmem:[#allocation2 + $0x100] ss:$8 sps:$4 sm:$0xff]   ;;  %v635_v4 = vld [vmem:[#allocation2 + $0x14] ss:$8 sps:$4 sm:$0xff]  }
  0x14   :  { %483 = vmatprep.subr.bf16.mxu1 %v631_v1  ;;  %443 = vmatpush1.bf16.xpose.msra.mxu0 %v633_v2  ;;  %v637_v5 = vld [vmem:[#allocation2 + $0x114] ss:$8 sps:$4 sm:$0xff]   ;;  %v639_v6 = vld [vmem:[#allocation2 + $0x10] ss:$8 sps:$4 sm:$0xff]   ;;  %v641_v8 = vld [vmem:[#allocation2 + $0x24] ss:$8 sps:$4 sm:$0xff]  }
  0x15   :  { %484 = vmatpush1.bf16.xpose.msra.mxu1 %v634_v3  ;;  %444 = vmatprep.subr.bf16.mxu0 %v635_v4  ;;  %v640_v7 = vld [vmem:[#allocation2 + $0x110] ss:$8 sps:$4 sm:$0xff]   ;;  %v643_v9 = vld [vmem:[#allocation2 + $0x124] ss:$8 sps:$4 sm:$0xff]   ;;  %v645_v10 = vld [vmem:[#allocation2 + $0x20] ss:$8 sps:$4 sm:$0xff]   ;;  %v95_v3 = vlaneseq }
  0x16   :  { %485 = vmatprep.subr.bf16.mxu1 %v637_v5  ;;  %v646_v11 = vld [vmem:[#allocation2 + $0x120] ss:$8 sps:$4 sm:$0xff]   ;;  %v647_v12 = vld [vmem:[#allocation2 + $0x34] ss:$8 sps:$4 sm:$0xff]   ;;  %v651_v14 = vld [vmem:[#allocation2 + $0x30] ss:$8 sps:$4 sm:$0xff]  }
  0x17   :  { %v649_v13 = vld [vmem:[#allocation2 + $0x134] ss:$8 sps:$4 sm:$0xff]   ;;  %v652_v15 = vld [vmem:[#allocation2 + $0x130] ss:$8 sps:$4 sm:$0xff]   ;;  %v653_v16 = vld [vmem:[#allocation2 + $0x44] ss:$8 sps:$4 sm:$0xff]  }
  0x18   :  { %v655_v17 = vld [vmem:[#allocation2 + $0x144] ss:$8 sps:$4 sm:$0xff]   ;;  %v657_v18 = vld [vmem:[#allocation2 + $0x40] ss:$8 sps:$4 sm:$0xff]   ;;  %v659_v20 = vld [vmem:[#allocation2 + $0x54] ss:$8 sps:$4 sm:$0xff]  }
  0x19   :  { %v658_v19 = vld [vmem:[#allocation2 + $0x140] ss:$8 sps:$4 sm:$0xff]   ;;  %v661_v21 = vld [vmem:[#allocation2 + $0x154] ss:$8 sps:$4 sm:$0xff]   ;;  %v663_v22 = vld [vmem:[#allocation2 + $0x50] ss:$8 sps:$4 sm:$0xff]  }
  0x1a   :  { %v664_v23 = vld [vmem:[#allocation2 + $0x150] ss:$8 sps:$4 sm:$0xff]   ;;  %v665_v24 = vld [vmem:[#allocation2 + $0x64] ss:$8 sps:$4 sm:$0xff]   ;;  %v669_v28 = vld [vmem:[#allocation2 + $0x60] ss:$8 sps:$4 sm:$0xff]  }
  0x1b   :  { %v667_v25 = vld [vmem:[#allocation2 + $0x164] ss:$8 sps:$4 sm:$0xff]   ;;  %v670_v29 = vld [vmem:[#allocation2 + $0x160] ss:$8 sps:$4 sm:$0xff]   ;;  %v671_v30 = vld [vmem:[#allocation2 + $0x74] ss:$8 sps:$4 sm:$0xff]  }
  0x1c   :  { %445 = vmatpush1.bf16.xpose.msra.mxu0 %v639_v6  ;;  %v799_v26 = vld [vmem:[%s820_s0] sm:$0xff]  ;;  %v673_v31 = vld [vmem:[#allocation2 + $0x174] ss:$8 sps:$4 sm:$0xff]   ;;  %v675_v32 = vld [vmem:[#allocation2 + $0x70] ss:$8 sps:$4 sm:$0xff]   ;;  %v96_v4 = vshrl.u32 %v95_v3, 7 }
  0x1d   :  { %486 = vmatpush1.bf16.xpose.msra.mxu1 %v640_v7  ;;  %446 = vmatprep.subr.bf16.mxu0 %v641_v8  ;;  %v561_v27 = vcombine.high %v799_v26, %v799_v26  ;;  %v676_v33 = vld [vmem:[#allocation2 + $0x170] ss:$8 sps:$4 sm:$0xff]   ;;  %v677_v34 = vld [vmem:[#allocation2 + $0x84] ss:$8 sps:$4 sm:$0xff]   ;;  %v681_v36 = vld [vmem:[#allocation2 + $0x80] ss:$8 sps:$4 sm:$0xff]   ;;  %v560_v2 = vcombine.low %v799_v26, %v799_v26 }
  0x1e   :  { %487 = vmatprep.subr.bf16.mxu1 %v643_v9  ;;  %v679_v35 = vld [vmem:[#allocation2 + $0x184] ss:$8 sps:$4 sm:$0xff]   ;;  %v682_v37 = vld [vmem:[#allocation2 + $0x180] ss:$8 sps:$4 sm:$0xff]   ;;  %v683_v38 = vld [vmem:[#allocation2 + $0x94] ss:$8 sps:$4 sm:$0xff]  }
  0x1f   :  { %474 = vmatprep.mubr.bf16.mxu0 %v561_v27  ;;  %515 = vmatprep.mubr.bf16.mxu1 %v561_v27  ;;  %v685_v39 = vld [vmem:[#allocation2 + $0x194] ss:$8 sps:$4 sm:$0xff]   ;;  %v687_v40 = vld [vmem:[#allocation2 + $0x90] ss:$8 sps:$4 sm:$0xff]   ;;  %v689_v42 = vld [vmem:[#allocation2 + $0xa4] ss:$8 sps:$4 sm:$0xff]  }
  0x20   :  { %v688_v41 = vld [vmem:[#allocation2 + $0x190] ss:$8 sps:$4 sm:$0xff]   ;;  %v691_v43 = vld [vmem:[#allocation2 + $0x1a4] ss:$8 sps:$4 sm:$0xff]   ;;  %v693_v44 = vld [vmem:[#allocation2 + $0xa0] ss:$8 sps:$4 sm:$0xff]  }
  0x21   :  { %v694_v45 = vld [vmem:[#allocation2 + $0x1a0] ss:$8 sps:$4 sm:$0xff]   ;;  %v695_v46 = vld [vmem:[#allocation2 + $0xb4] ss:$8 sps:$4 sm:$0xff]   ;;  %v699_v48 = vld [vmem:[#allocation2 + $0xb0] ss:$8 sps:$4 sm:$0xff]  }
  0x22   :  { %v697_v47 = vld [vmem:[#allocation2 + $0x1b4] ss:$8 sps:$4 sm:$0xff]   ;;  %v700_v49 = vld [vmem:[#allocation2 + $0x1b0] ss:$8 sps:$4 sm:$0xff]   ;;  %v701_v50 = vld [vmem:[#allocation2 + $0xc4] ss:$8 sps:$4 sm:$0xff]  }
  0x23   :  { %v703_v51 = vld [vmem:[#allocation2 + $0x1c4] ss:$8 sps:$4 sm:$0xff]   ;;  %v705_v52 = vld [vmem:[#allocation2 + $0xc0] ss:$8 sps:$4 sm:$0xff]   ;;  %v707_v54 = vld [vmem:[#allocation2 + $0xd4] ss:$8 sps:$4 sm:$0xff]  }
  0x24   :  { %447 = vmatpush1.bf16.xpose.msra.mxu0 %v645_v10  ;;  %v706_v53 = vld [vmem:[#allocation2 + $0x1c0] ss:$8 sps:$4 sm:$0xff]   ;;  %v709_v55 = vld [vmem:[#allocation2 + $0x1d4] ss:$8 sps:$4 sm:$0xff]   ;;  %v711_v56 = vld [vmem:[#allocation2 + $0xd0] ss:$8 sps:$4 sm:$0xff]  }
  0x25   :  { %488 = vmatpush1.bf16.xpose.msra.mxu1 %v646_v11  ;;  %448 = vmatprep.subr.bf16.mxu0 %v647_v12  ;;  %v712_v57 = vld [vmem:[#allocation2 + $0x1d0] ss:$8 sps:$4 sm:$0xff]   ;;  %v713_v58 = vld [vmem:[#allocation2 + $0xe4] ss:$8 sps:$4 sm:$0xff]   ;;  %v717_v60 = vld [vmem:[#allocation2 + $0xe0] ss:$8 sps:$4 sm:$0xff]  }
  0x26   :  { %489 = vmatprep.subr.bf16.mxu1 %v649_v13  ;;  %v715_v59 = vld [vmem:[#allocation2 + $0x1e4] ss:$8 sps:$4 sm:$0xff]   ;;  %v718_v61 = vld [vmem:[#allocation2 + $0x1e0] ss:$8 sps:$4 sm:$0xff]   ;;  %v719_v62 = vld [vmem:[#allocation2 + $0xf4] ss:$8 sps:$4 sm:$0xff]  }
  0x27   :  { %v721_v63 = vld [vmem:[#allocation2 + $0x1f4] ss:$8 sps:$4 sm:$0xff]   ;;  %v723_v0 = vld [vmem:[#allocation2 + $0xf0] ss:$8 sps:$4 sm:$0xff]   ;;  %v97_v5 = vsub.s32 0, %v96_v4  ;;  %v105_v6 = vsub.s32 2, %v96_v4 }
  0x28   :  { %v724_v1 = vld [vmem:[#allocation2 + $0x1f0] ss:$8 sps:$4 sm:$0xff]   ;;  %v93_v7 = vld [vmem:[%s822_s2] sm:$0xf]  ;;  %v101_v8 = vsub.s32 1, %v96_v4  ;;  %v109_v9 = vsub.s32 3, %v96_v4 }
  0x29   :  { %v98_v10 = vrot.slane %v93_v7, %v97_v5  ;;  %v106_v11 = vrot.slane %v93_v7, %v105_v6 }
  0x2a   :  { %v102_v12 = vrot.slane %v93_v7, %v101_v8  ;;  %v110_v13 = vrot.slane %v93_v7, %v109_v9 }
  0x2c   :  { %449 = vmatpush1.bf16.xpose.msra.mxu0 %v651_v14 }
  0x2d   :  { %490 = vmatpush1.bf16.xpose.msra.mxu1 %v652_v15  ;;  %450 = vmatprep.subr.bf16.mxu0 %v653_v16 }
  0x2e   :  { %491 = vmatprep.subr.bf16.mxu1 %v655_v17 }
  0x34   :  { %451 = vmatpush1.bf16.xpose.msra.mxu0 %v657_v18 }
  0x35   :  { %492 = vmatpush1.bf16.xpose.msra.mxu1 %v658_v19  ;;  %452 = vmatprep.subr.bf16.mxu0 %v659_v20 }
  0x36   :  { %493 = vmatprep.subr.bf16.mxu1 %v661_v21 }
  0x3c   :  { %453 = vmatpush1.bf16.xpose.msra.mxu0 %v663_v22 }
  0x3d   :  { %494 = vmatpush1.bf16.xpose.msra.mxu1 %v664_v23  ;;  %454 = vmatprep.subr.bf16.mxu0 %v665_v24 }
  0x3e   :  { %495 = vmatprep.subr.bf16.mxu1 %v667_v25 }
  0x44   :  { %455 = vmatpush1.bf16.xpose.msra.mxu0 %v669_v28 }
  0x45   :  { %496 = vmatpush1.bf16.xpose.msra.mxu1 %v670_v29  ;;  %456 = vmatprep.subr.bf16.mxu0 %v671_v30 }
  0x46   :  { %497 = vmatprep.subr.bf16.mxu1 %v673_v31 }
  0x4c   :  { %457 = vmatpush1.bf16.xpose.msra.mxu0 %v675_v32 }
  0x4d   :  { %498 = vmatpush1.bf16.xpose.msra.mxu1 %v676_v33  ;;  %458 = vmatprep.subr.bf16.mxu0 %v677_v34 }
  0x4e   :  { %499 = vmatprep.subr.bf16.mxu1 %v679_v35 }
  0x54   :  { %459 = vmatpush1.bf16.xpose.msra.mxu0 %v681_v36 }
  0x55   :  { %500 = vmatpush1.bf16.xpose.msra.mxu1 %v682_v37  ;;  %460 = vmatprep.subr.bf16.mxu0 %v683_v38 }
  0x56   :  { %501 = vmatprep.subr.bf16.mxu1 %v685_v39 }
  0x5c   :  { %461 = vmatpush1.bf16.xpose.msra.mxu0 %v687_v40 }
  0x5d   :  { %502 = vmatpush1.bf16.xpose.msra.mxu1 %v688_v41  ;;  %462 = vmatprep.subr.bf16.mxu0 %v689_v42 }
  0x5e   :  { %503 = vmatprep.subr.bf16.mxu1 %v691_v43 }
  0x64   :  { %463 = vmatpush1.bf16.xpose.msra.mxu0 %v693_v44 }
  0x65   :  { %504 = vmatpush1.bf16.xpose.msra.mxu1 %v694_v45  ;;  %464 = vmatprep.subr.bf16.mxu0 %v695_v46 }
  0x66   :  { %505 = vmatprep.subr.bf16.mxu1 %v697_v47 }
  0x6c   :  { %465 = vmatpush1.bf16.xpose.msra.mxu0 %v699_v48 }
  0x6d   :  { %506 = vmatpush1.bf16.xpose.msra.mxu1 %v700_v49  ;;  %466 = vmatprep.subr.bf16.mxu0 %v701_v50 }
  0x6e   :  { %507 = vmatprep.subr.bf16.mxu1 %v703_v51 }
  0x74   :  { %467 = vmatpush1.bf16.xpose.msra.mxu0 %v705_v52 }
  0x75   :  { %508 = vmatpush1.bf16.xpose.msra.mxu1 %v706_v53  ;;  %468 = vmatprep.subr.bf16.mxu0 %v707_v54 }
  0x76   :  { %509 = vmatprep.subr.bf16.mxu1 %v709_v55 }
  0x7c   :  { %469 = vmatpush1.bf16.xpose.msra.mxu0 %v711_v56 }
  0x7d   :  { %510 = vmatpush1.bf16.xpose.msra.mxu1 %v712_v57  ;;  %470 = vmatprep.subr.bf16.mxu0 %v713_v58 }
  0x7e   :  { %511 = vmatprep.subr.bf16.mxu1 %v715_v59 }
  0x84   :  { %471 = vmatpush1.bf16.xpose.msra.mxu0 %v717_v60 }
  0x85   :  { %512 = vmatpush1.bf16.xpose.msra.mxu1 %v718_v61  ;;  %472 = vmatprep.subr.bf16.mxu0 %v719_v62 }
  0x86   :  { %513 = vmatprep.subr.bf16.mxu1 %v721_v63 }
  0x8c   :  { %473 = vmatpush1.bf16.xpose.msra.mxu0 %v723_v0 }
  0x8d   :  { %514 = vmatpush1.bf16.xpose.msra.mxu1 %v724_v1 }
  0x93   :  { %475 = vmatmul.mubr.bf16.vlgmr.msra.gmra.mrb[0].mxu0 %v560_v2 }
  0x94   :  { %516 = vmatmul.mubr.bf16.vlgmr.msra.gmra.mrb[0].mxu1 %v560_v2 }
 0x166   :  { %v476_v14 = vpop.f32.mrb[0].mxu0 }
 0x167   :  { %v517_v15 = vpop.f32.mrb[0].mxu1  ;;  %v477_v16 = vadd.f32 %v476_v14, %v98_v10  ;;  %v478_v18 = vpop.f32.mrb[1].mxu0 }
 0x168   :  { %v518_v17 = vadd.f32 %v517_v15, %v106_v11  ;;  %v519_v19 = vpop.f32.mrb[1].mxu1  ;;  %v479_v20 = vadd.f32 %v478_v18, %v102_v12  ;;  %v480_v22 = vpop.f32.mrb[2].mxu0 }
 0x169   :  { %v520_v21 = vadd.f32 %v519_v19, %v110_v13  ;;  %v521_v23 = vpop.f32.mrb[2].mxu1  ;;  %v481_v24 = vpop.f32.mrb[3].mxu0 }
 0x16a   :  { %v522_v25 = vpop.f32.mrb[3].mxu1  ;;  %v524_v26 = vmax.f32 %v477_v16, %v479_v20 }
 0x16b   :  { %v525_v27 = vmax.f32 %v518_v17, %v520_v21 }
 0x16d   :  { %v526_v28 = vmax.f32 %v524_v26, %v525_v27 }
 0x16f   :  { %527 = vmax.xlane.f32.xlu0 %v526_v28 }
 0x1fc   :  { %v528_v29 = vpop.xlane.xlu0 %527 }
 0x1fd   :  { %v529_v30 = vsub.f32 %v477_v16, %v528_v29  ;;  %v530_v31 = vsub.f32 %v479_v20, %v528_v29  ;;  %v531_v32 = vsub.f32 %v518_v17, %v528_v29  ;;  %v532_v33 = vsub.f32 %v520_v21, %v528_v29 }
 0x1ff   :  { %v533_v34 = vmul.f32 1.442695, %v529_v30  ;;  %v535_v35 = vmul.f32 1.442695, %v530_v31  ;;  %v537_v36 = vmul.f32 1.442695, %v531_v32 }
 0x200   :  { %v539_v37 = vmul.f32 1.442695, %v532_v33 }
 0x201   :  { %727 = vpow2.f32 %v533_v34 }
 0x202   :  { %729 = vpow2.f32 %v535_v35 }
 0x203   :  { %731 = vpow2.f32 %v537_v36 }
 0x204   :  { %733 = vpow2.f32 %v539_v37 }
 0x20b   :  { %v728_v38 = vpop.eup %727 }
 0x20c   :  { %v730_v39 = vpop.eup %729 }
 0x20d   :  { %v541_v40 = vadd.f32 %v730_v39, %v728_v38  ;;  %v732_v41 = vpop.eup %731 }
 0x20e   :  { %v734_v43 = vpop.eup %733 }
 0x20f   :  { %v542_v42 = vadd.f32 %v732_v41, %v541_v40 }
 0x211   :  { %v543_v44 = vadd.f32 %v734_v43, %v542_v42 }
 0x213   :  { %544 = vadd.xlane.f32.xlu0 %v543_v44 }
 0x2a0   :  { %v545_v45 = vpop.xlane.xlu0 %544 }
 0x2a1   :  { %735 = vrcp.f32 %v545_v45 }
 0x2ab   :  { %v736_v46 = vpop.eup %735 }
 0x2ac   :  { %v547_v47 = vmul.f32 %v736_v46, %v728_v38  ;;  %v548_v48 = vmul.f32 %v736_v46, %v730_v39  ;;  %v549_v49 = vmul.f32 %v736_v46, %v732_v41  ;;  %v550_v50 = vmul.f32 %v736_v46, %v734_v43 }
 0x2ae   :  { %551 = vst [vmem:[%s823_s3] sm:$0xff] %v547_v47  ;;  %552 = vst [vmem:[%s823_s3 + $0x8] sm:$0xff] %v548_v48 }
 0x2af   :  { %553 = vst [vmem:[%s823_s3 + $0x10] sm:$0xff] %v549_v49  ;;  %554 = vst [vmem:[%s823_s3 + $0x18] sm:$0xff] %v550_v50 }
 0x2b0   :  { %559 = vsyncpa [#allocation3], 1 }

</bundles_post_ra>
